<compile_context>
chip_gen: v7x
topology: tpu7x:2x2x1
jax: 0.10.0
libtpu: 0.0.40
codegen_flags: <defaults>
</compile_context>

<pallas_src>
import functools

import jax
import jax.numpy as jnp
from jax.experimental import pallas as pl
from jax.experimental.pallas import tpu as pltpu

_LANE = 128     # keep matmul K / N multiples of the vreg lane width
_SUBLANE = 8    # f32 sublane count: batch tiles are multiples of 8


def _round_up(n, m):
    return -(-n // m) * m


def _elementwise_dtype():
    """bf16 elementwise on v6e/v7x (bf16 VPU); f32 on v5e / CPU interpret."""
    try:
        kind = jax.devices()[0].device_kind.lower()
    except Exception:
        return jnp.float32
    if ("v6" in kind) or ("v7" in kind) or ("trillium" in kind):
        return jnp.bfloat16
    return jnp.float32


# ----------------------------------------------------------------------------
# Fused kernel: x -> [Linear -> LeakyReLU]*(n-1) -> Linear -> sigmoid
# (BN eval affine pre-folded into the next Linear; Dropout is identity in eval)
# ----------------------------------------------------------------------------
def _make_fused_mlp_kernel(n_layers, act_dtype):
    def kernel(*refs):
        # refs = (x_ref, [w0, b0, w1, b1, ...], o_ref)
        x_ref = refs[0]
        o_ref = refs[-1]
        p = refs[1:-1]

        h = x_ref[...]                          # (tb, K0_pad) bf16
        for i in range(n_layers - 1):
            w = p[2 * i][...]                   # (K_pad, N_pad) bf16, BN-folded
            b = p[2 * i + 1][...]               # (1, N_pad)     f32,  BN-folded
            y = jnp.dot(h.astype(w.dtype), w,
                        preferred_element_type=jnp.float32) + b
            y = y.astype(act_dtype)
            h = jnp.where(y >= 0, y, y * 0.01)  # LeakyReLU (default slope 0.01)
            # Dropout(0.5) is identity in eval mode.

        wf = p[-2][...]
        bf = p[-1][...]
        y = jnp.dot(h.astype(wf.dtype), wf,
                    preferred_element_type=jnp.float32) + bf
        o_ref[...] = jax.nn.sigmoid(y).astype(o_ref.dtype)

    return kernel


# ----------------------------------------------------------------------------
# Parameter construction (PyTorch-default-style init, BN defaults, BN folded
# forward into the following Linear; weights lane-padded and cast to bf16)
# ----------------------------------------------------------------------------
def init_mlp_params(key, in_dim, hidden_dims, out_dim, *,
                    matmul_dtype=jnp.bfloat16, eps=1e-5):
    """Returns (kernel_params, raw_params):
      kernel_params: BN-folded, feature-padded, bf16-weight params for the kernel
      raw_params:    un-folded f32 params for a pure-JAX reference check."""
    dims = [in_dim] + list(hidden_dims) + [out_dim]
    n_layers = len(dims) - 1

    raw_hidden, raw_final = [], None
    folded = []                # (W f32, b f32) per Linear, with previous BN folded in
    pending_scale = None       # (prev_out,)
    pending_shift = None       # (1, prev_out)

    for li, (_in, _out) in enumerate(zip(dims, dims[1:])):
        key, kw, kb = jax.random.split(key, 3)
        bound = float(_in) ** -0.5
        w = jax.random.uniform(kw, (_in, _out), jnp.float32, -bound, bound)
        b = jax.random.uniform(kb, (1, _out), jnp.float32, -bound, bound)

        # Fold the previous layer's eval-mode BatchNorm affine into this Linear:
        #   (r*scale + shift) @ W + b == r @ (W*scale[:,None]) + (shift@W + b)
        # Exact for any sign of scale.
        w_f, b_f = w, b
        if pending_scale is not None:
            b_f = b + pending_shift @ w
            w_f = w * pending_scale[:, None]
        folded.append((w_f, b_f))

        if li < n_layers - 1:
            # BatchNorm1d defaults: gamma=1, beta=0, running_mean=0, running_var=1
            gamma = jnp.ones((_out,), jnp.float32)
            beta = jnp.zeros((_out,), jnp.float32)
            run_mean = jnp.zeros((_out,), jnp.float32)
            run_var = jnp.ones((_out,), jnp.float32)
            scale = gamma / jnp.sqrt(run_var + eps)
            shift = beta - run_mean * scale
            pending_scale, pending_shift = scale, shift[None, :]
            raw_hidden.append((w, b, scale, shift))
        else:
            raw_final = (w, b)

    # Pad K / N to lane multiples once on the host; cast weights to bf16.
    layers = []
    for w, b in folded:
        kp = _round_up(w.shape[0], _LANE)
        npad = _round_up(w.shape[1], _LANE)
        w_pad = jnp.zeros((kp, npad), jnp.float32).at[:w.shape[0], :w.shape[1]].set(w)
        b_pad = jnp.zeros((1, npad), jnp.float32).at[:, :b.shape[1]].set(b)
        layers.append((w_pad.astype(matmul_dtype), b_pad))

    kernel_params = {"layers": tuple(layers)}
    raw_params = {"hidden": raw_hidden, "final": raw_final}
    return kernel_params, raw_params


def mlp_reference(x, raw_params):
    """Pure-JAX eval-mode reference of the PyTorch module (f32)."""
    h = x
    for w, b, scale, shift in raw_params["hidden"]:
        a = h @ w + b
        r = jnp.where(a >= 0, a, 0.01 * a)      # LeakyReLU
        h = r * scale + shift                   # BatchNorm1d (eval); Dropout = id
    wf, bf = raw_params["final"]
    return jnp.squeeze(jax.nn.sigmoid(h @ wf + bf))


# ----------------------------------------------------------------------------
# Forward pass: single fused pallas_call, 1-D grid over batch
# ----------------------------------------------------------------------------
@functools.partial(jax.jit, static_argnames=("out_dim", "tile_b"))
def mlp_forward(x, params, *, out_dim, tile_b=512):
    layers = params["layers"]
    n_layers = len(layers)
    in_dim_pad = layers[0][0].shape[0]
    out_dim_pad = layers[-1][0].shape[1]
    B, in_dim = x.shape

    # Batch tile: tile_b rows for large batches (amortizes ~0.35us/step); for
    # small batches use >=2 grid steps (when B >= 16) so ("parallel",) can
    # shard the grid across v7x's two TensorCores.
    if B > tile_b:
        tb = _round_up(tile_b, _SUBLANE)
    elif B >= 2 * _SUBLANE:
        tb = _round_up(-(-B // 2), _SUBLANE)
    else:
        tb = _round_up(B, _SUBLANE)
    B_pad = _round_up(B, tb)

    # Stream x as a lane-padded bf16 tile (halves streamed HBM bytes).
    x = jnp.pad(x, ((0, B_pad - B), (0, in_dim_pad - in_dim))).astype(jnp.bfloat16)

    flat_params = [a for layer in layers for a in layer]

    # Explicit VMEM budget (critical on v7x: 64 MiB physical / 32 MiB scoped).
    param_bytes = sum(int(p.size) * p.dtype.itemsize for p in flat_params)
    x_tile_bytes = tb * in_dim_pad * 2            # bf16 activation tile
    o_tile_bytes = tb * out_dim_pad * 4           # f32 output tile
    max_np = max(w.shape[1] for w, _ in layers)
    tmp_bytes = 4 * tb * max_np * 4               # in-kernel temporaries (generous)
    vmem_limit = int(min(64 * 1024 * 1024,
                         max(16 * 1024 * 1024,
                             2 * param_bytes                       # worst case double-buffered
                             + 2 * (x_tile_bytes + o_tile_bytes)   # double-buffered act tiles
                             + tmp_bytes + (4 << 20))))
    # TODO(synk): where supported, pipeline_mode=pl.Buffered(1) on the constant
    #             index_map param specs would drop params to single-buffered.

    # x / output are tiled over the batch; every parameter is a full-array
    # block with a constant index_map, so it stays resident in VMEM.
    in_specs = [pl.BlockSpec((tb, in_dim_pad), lambda i: (i, 0))]
    in_specs += [pl.BlockSpec(p.shape, lambda i: (0, 0)) for p in flat_params]
    out_specs = pl.BlockSpec((tb, out_dim_pad), lambda i: (i, 0))   # lane-dense store

    y = pl.pallas_call(
        _make_fused_mlp_kernel(n_layers, _elementwise_dtype()),
        out_shape=jax.ShapeDtypeStruct((B_pad, out_dim_pad), jnp.float32),
        grid=(B_pad // tb,),
        in_specs=in_specs,
        out_specs=out_specs,
        compiler_params=pltpu.CompilerParams(
            dimension_semantics=("parallel",),
            vmem_limit_bytes=vmem_limit),
    )(x, *flat_params)

    y = y[:B, :out_dim]
    # torch .squeeze(): drop all size-1 dims (glue, not hot path)
    return jnp.squeeze(y)


if __name__ == "__main__":
    key = jax.random.PRNGKey(0)
    kx, kp = jax.random.split(key)

    batch, in_dim, hidden_dims, out_dim = 8, 16, (32, 32), 1
    x = jax.random.normal(kx, (batch, in_dim), jnp.float32)
    kernel_params, raw_params = init_mlp_params(kp, in_dim, hidden_dims, out_dim)

    out = jax.block_until_ready(mlp_forward(x, kernel_params, out_dim=out_dim))
    ref = mlp_reference(x, raw_params)

    assert out.shape == (batch,), out.shape
    assert bool(jnp.all((out >= 0.0) & (out <= 1.0)))
    # bf16-weight matmuls vs f32 reference: tolerance compare, not bit compare.
    assert bool(jnp.allclose(out, ref, atol=5e-2, rtol=5e-2)), (out, ref)
    print("KERNEL_OK")
</pallas_src>

<mosaic_0001>
module attributes {stable_mosaic.version = 11 : i64} {
  func.func @kernel(%arg0: i32, %arg1: memref<8x128xbf16, #tpu.memory_space<vmem>>, %arg2: memref<128x128xbf16, #tpu.memory_space<vmem>>, %arg3: memref<1x128xf32, #tpu.memory_space<vmem>>, %arg4: memref<128x128xbf16, #tpu.memory_space<vmem>>, %arg5: memref<1x128xf32, #tpu.memory_space<vmem>>, %arg6: memref<128x128xbf16, #tpu.memory_space<vmem>>, %arg7: memref<1x128xf32, #tpu.memory_space<vmem>>, %arg8: memref<8x128xf32, #tpu.memory_space<vmem>>) attributes {dimension_semantics = [#tpu.dimension_semantics<parallel>], iteration_bounds = array<i64: 1>, scalar_prefetch = 0 : i64, scratch_operands = 0 : i64, tpu.core_type = #tpu.core_type<tc>, window_params = [{transform_indices = @transform_0, window_bounds = array<i64: 8, 128>}, {pipeline_mode = #tpu.pipeline_mode<synchronous>, transform_indices = @transform_1, window_bounds = array<i64: 128, 128>}, {pipeline_mode = #tpu.pipeline_mode<synchronous>, transform_indices = @transform_2, window_bounds = array<i64: 1, 128>}, {pipeline_mode = #tpu.pipeline_mode<synchronous>, transform_indices = @transform_3, window_bounds = array<i64: 128, 128>}, {pipeline_mode = #tpu.pipeline_mode<synchronous>, transform_indices = @transform_4, window_bounds = array<i64: 1, 128>}, {pipeline_mode = #tpu.pipeline_mode<synchronous>, transform_indices = @transform_5, window_bounds = array<i64: 128, 128>}, {pipeline_mode = #tpu.pipeline_mode<synchronous>, transform_indices = @transform_6, window_bounds = array<i64: 1, 128>}, {transform_indices = @transform_7, window_bounds = array<i64: 8, 128>}]} {
    %c0 = arith.constant 0 : index
    %c0_0 = arith.constant 0 : index
    %0 = vector.load %arg1[%c0, %c0_0] : memref<8x128xbf16, #tpu.memory_space<vmem>>, vector<8x128xbf16>
    %c0_1 = arith.constant 0 : index
    %c0_2 = arith.constant 0 : index
    %1 = vector.load %arg2[%c0_1, %c0_2] : memref<128x128xbf16, #tpu.memory_space<vmem>>, vector<128x128xbf16>
    %c0_3 = arith.constant 0 : index
    %c0_4 = arith.constant 0 : index
    %2 = vector.load %arg3[%c0_3, %c0_4] : memref<1x128xf32, #tpu.memory_space<vmem>>, vector<1x128xf32>
    %cst = arith.constant dense<0.000000e+00> : vector<8x128xf32>
    %3 = tpu.matmul %0, %1, %cst {dimension_numbers = #tpu.dot_dimension_numbers<[1], [0], [0], [1], [0, 0, 1, 1], [], []>} : vector<8x128xbf16>, vector<128x128xbf16>, vector<8x128xf32> -> vector<8x128xf32>
    %4 = vector.broadcast %2 : vector<1x128xf32> to vector<8x128xf32>
    %5 = arith.addf %3, %4 : vector<8x128xf32>
    %cst_5 = arith.constant 0.000000e+00 : f32
    %6 = vector.broadcast %cst_5 : f32 to vector<8x128xf32>
    %7 = arith.cmpf oge, %5, %6 : vector<8x128xf32>
    %cst_6 = arith.constant 0.00999999977 : f32
    %8 = vector.broadcast %cst_6 : f32 to vector<8x128xf32>
    %9 = arith.mulf %5, %8 : vector<8x128xf32>
    %10 = arith.select %7, %5, %9 : vector<8x128xi1>, vector<8x128xf32>
    %c0_7 = arith.constant 0 : index
    %c0_8 = arith.constant 0 : index
    %11 = vector.load %arg4[%c0_7, %c0_8] : memref<128x128xbf16, #tpu.memory_space<vmem>>, vector<128x128xbf16>
    %c0_9 = arith.constant 0 : index
    %c0_10 = arith.constant 0 : index
    %12 = vector.load %arg5[%c0_9, %c0_10] : memref<1x128xf32, #tpu.memory_space<vmem>>, vector<1x128xf32>
    %13 = arith.truncf %10 : vector<8x128xf32> to vector<8x128xbf16>
    %cst_11 = arith.constant dense<0.000000e+00> : vector<8x128xf32>
    %14 = tpu.matmul %13, %11, %cst_11 {dimension_numbers = #tpu.dot_dimension_numbers<[1], [0], [0], [1], [0, 0, 1, 1], [], []>} : vector<8x128xbf16>, vector<128x128xbf16>, vector<8x128xf32> -> vector<8x128xf32>
    %15 = vector.broadcast %12 : vector<1x128xf32> to vector<8x128xf32>
    %16 = arith.addf %14, %15 : vector<8x128xf32>
    %cst_12 = arith.constant 0.000000e+00 : f32
    %17 = vector.broadcast %cst_12 : f32 to vector<8x128xf32>
    %18 = arith.cmpf oge, %16, %17 : vector<8x128xf32>
    %cst_13 = arith.constant 0.00999999977 : f32
    %19 = vector.broadcast %cst_13 : f32 to vector<8x128xf32>
    %20 = arith.mulf %16, %19 : vector<8x128xf32>
    %21 = arith.select %18, %16, %20 : vector<8x128xi1>, vector<8x128xf32>
    %c0_14 = arith.constant 0 : index
    %c0_15 = arith.constant 0 : index
    %22 = vector.load %arg6[%c0_14, %c0_15] : memref<128x128xbf16, #tpu.memory_space<vmem>>, vector<128x128xbf16>
    %c0_16 = arith.constant 0 : index
    %c0_17 = arith.constant 0 : index
    %23 = vector.load %arg7[%c0_16, %c0_17] : memref<1x128xf32, #tpu.memory_space<vmem>>, vector<1x128xf32>
    %24 = arith.truncf %21 : vector<8x128xf32> to vector<8x128xbf16>
    %cst_18 = arith.constant dense<0.000000e+00> : vector<8x128xf32>
    %25 = tpu.matmul %24, %22, %cst_18 {dimension_numbers = #tpu.dot_dimension_numbers<[1], [0], [0], [1], [0, 0, 1, 1], [], []>} : vector<8x128xbf16>, vector<128x128xbf16>, vector<8x128xf32> -> vector<8x128xf32>
    %26 = vector.broadcast %23 : vector<1x128xf32> to vector<8x128xf32>
    %27 = arith.addf %25, %26 : vector<8x128xf32>
    %28 = arith.negf %27 : vector<8x128xf32>
    %29 = math.exp %28 : vector<8x128xf32>
    %cst_19 = arith.constant 1.000000e+00 : f32
    %30 = vector.broadcast %cst_19 : f32 to vector<8x128xf32>
    %31 = arith.addf %30, %29 : vector<8x128xf32>
    %32 = arith.divf %30, %31 : vector<8x128xf32>
    %c0_20 = arith.constant 0 : index
    %c0_21 = arith.constant 0 : index
    %33 = vector.load %arg8[%c0_20, %c0_21] : memref<8x128xf32, #tpu.memory_space<vmem>>, vector<8x128xf32>
    tpu.vector_store %arg8[%c0_20, %c0_21], %32 {strides = array<i32>} : memref<8x128xf32, #tpu.memory_space<vmem>>, vector<8x128xf32>,
    return
  }
  func.func @transform_0(%arg0: i32) -> (i32, i32) {
    %c0_i32 = arith.constant 0 : i32
    %c0_i32_0 = arith.constant 0 : i32
    return %arg0, %c0_i32 : i32, i32
  }
  func.func @transform_1(%arg0: i32) -> (i32, i32) {
    %c0_i32 = arith.constant 0 : i32
    %c0_i32_0 = arith.constant 0 : i32
    %c0_i32_1 = arith.constant 0 : i32
    return %c0_i32, %c0_i32_0 : i32, i32
  }
  func.func @transform_2(%arg0: i32) -> (i32, i32) {
    %c0_i32 = arith.constant 0 : i32
    %c0_i32_0 = arith.constant 0 : i32
    %c0_i32_1 = arith.constant 0 : i32
    return %c0_i32, %c0_i32_0 : i32, i32
  }
  func.func @transform_3(%arg0: i32) -> (i32, i32) {
    %c0_i32 = arith.constant 0 : i32
    %c0_i32_0 = arith.constant 0 : i32
    %c0_i32_1 = arith.constant 0 : i32
    return %c0_i32, %c0_i32_0 : i32, i32
  }
  func.func @transform_4(%arg0: i32) -> (i32, i32) {
    %c0_i32 = arith.constant 0 : i32
    %c0_i32_0 = arith.constant 0 : i32
    %c0_i32_1 = arith.constant 0 : i32
    return %c0_i32, %c0_i32_0 : i32, i32
  }
  func.func @transform_5(%arg0: i32) -> (i32, i32) {
    %c0_i32 = arith.constant 0 : i32
    %c0_i32_0 = arith.constant 0 : i32
    %c0_i32_1 = arith.constant 0 : i32
    return %c0_i32, %c0_i32_0 : i32, i32
  }
  func.func @transform_6(%arg0: i32) -> (i32, i32) {
    %c0_i32 = arith.constant 0 : i32
    %c0_i32_0 = arith.constant 0 : i32
    %c0_i32_1 = arith.constant 0 : i32
    return %c0_i32, %c0_i32_0 : i32, i32
  }
  func.func @transform_7(%arg0: i32) -> (i32, i32) {
    %c0_i32 = arith.constant 0 : i32
    %c0_i32_0 = arith.constant 0 : i32
    return %arg0, %c0_i32 : i32, i32
  }
}

</mosaic_0001>

<bundles_post_ra>
// kernel: mlp_forward.1
= control target key start
LH: loop header
LB: loop body
LE: loop exit
PB: predicated region body
PF: predicated region fallthrough
CT: control target
= control target key end

     0   :  { %12 = vsyncpa [#allocation3], 0  ;;  %s787_s0 = inlined_call_operand.vmem [shape: bf16[8,128], index: 0, kind: input, shape index: {}]   ;;  %s788_s1 = inlined_call_operand.hbm [shape: bf16[128,128], index: 1, kind: input, shape index: {}]   ;;  %s789_s2 = inlined_call_operand.vmem [shape: f32[1,128], index: 2, kind: input, shape index: {}]   ;;  %s790_s3 = inlined_call_operand.hbm [shape: bf16[128,128], index: 3, kind: input, shape index: {}]   ;;  %s791_s4 = inlined_call_operand.vmem [shape: f32[1,128], index: 4, kind: input, shape index: {}]   ;;  %s792_s5 = inlined_call_operand.hbm [shape: bf16[128,128], index: 5, kind: input, shape index: {}]   ;;  %s793_s6 = inlined_call_operand.vmem [shape: f32[1,128], index: 6, kind: input, shape index: {}]   ;;  %s794_s7 = inlined_call_operand.vmem [shape: f32[8,128], index: 7, kind: output, shape index: {}]  }
   0x1   :  { %13 = vsyncpa [#allocation5], 0  ;;  %s643_s24 = smov [#allocation4]   ;;  %s644_s26 = smov [#allocation2]  }
   0x2   :  { %s35_s25 = sshll.u32 %s643_s24, 4  ;;  %s21_s27 = sshll.u32 %s644_s26, 4  ;;  %s36_s25 = int_to_ptr.vmem [resolvable:$true] %s35_s25  ;;  %s690_s27 = int_to_ptr.vmem [resolvable:$true] %s21_s27 }
   0x3   :  { %s573_s30 = scalar_lea.hbm %s790_s3, 1024 }
   0x4   :  { %p574_p0 = scmp.ne.s32.totalorder %s790_s3, %s573_s30  ;;  %p577_p1 = scmp.lt.u32.totalorder %s573_s30, %s790_s3 }
   0x6   :  { %p579_p2 = pnand %p577_p1, %p574_p0 }
   0x8   :  { %582 = shalt.err (!%p579_p2)
}
   0x9   :  { %s583_s12 = scalar_lea.vmem %s36_s25, 1024  ;;  %p588_p4 = scmp.lt.s32.totalorder %s36_s25, %s36_s25 }
   0xa   :  { %p584_p3 = scmp.ne.s32.totalorder %s36_s25, %s583_s12  ;;  %p589_p5 = scmp.lt.s32.totalorder %s583_s12, %s583_s12 }
   0xc   :  { %p590_p6 = por %p589_p5, %p588_p4 }
   0xe   :  { %p591_p7 = pnand %p590_p6, %p584_p3 }
  0x10   :  { %594 = shalt.err (!%p591_p7)
}
  0x11   :  { %s645_s13 = smov 64   ;;  %s646_s14 = smov 4  }
  0x12   :  { %41 = dma.hbm_to_vmem [thread:$0]  %s790_s3, 1024, %s36_s25, [#allocation5], %s645_s13, %s645_s13, %s646_s14  }
  0x13   :  { %s595_s19 = scalar_lea.hbm %s788_s1, 1024 }
  0x14   :  { %p596_p8 = scmp.ne.s32.totalorder %s788_s1, %s595_s19  ;;  %p599_p9 = scmp.lt.u32.totalorder %s595_s19, %s788_s1 }
  0x16   :  { %p601_p10 = pnand %p599_p9, %p596_p8 }
  0x18   :  { %604 = shalt.err (!%p601_p10)
}
  0x19   :  { %s605_s24 = scalar_lea.vmem %s690_s27, 1024  ;;  %p610_p12 = scmp.lt.s32.totalorder %s690_s27, %s690_s27 }
  0x1a   :  { %p606_p11 = scmp.ne.s32.totalorder %s690_s27, %s605_s24  ;;  %p611_p13 = scmp.lt.s32.totalorder %s605_s24, %s605_s24 }
  0x1c   :  { %p612_p0 = por %p611_p13, %p610_p12 }
  0x1e   :  { %p613_p1 = pnand %p612_p0, %p606_p11 }
  0x20   :  { %616 = shalt.err (!%p613_p1)
}
  0x21   :  { %27 = dma.hbm_to_vmem [thread:$0]  %s788_s1, 1024, %s690_s27, [#allocation3], %s645_s13, %s645_s13, %s646_s14  }
  0x22   :  { %s647_s26 = smov [#allocation6]   ;;  %s617_s8 = scalar_lea.hbm %s792_s5, 1024 }
  0x23   :  { %s49_s28 = sshll.u32 %s647_s26, 4  ;;  %p618_p2 = scmp.ne.s32.totalorder %s792_s5, %s617_s8  ;;  %s50_s28 = int_to_ptr.vmem [resolvable:$true] %s49_s28 }
  0x24   :  { %p621_p3 = scmp.lt.u32.totalorder %s617_s8, %s792_s5 }
  0x26   :  { %p623_p4 = pnand %p621_p3, %p618_p2 }
  0x28   :  { %626 = shalt.err (!%p623_p4)
}
  0x29   :  { %s627_s15 = scalar_lea.vmem %s50_s28, 1024  ;;  %p632_p6 = scmp.lt.s32.totalorder %s50_s28, %s50_s28 }
  0x2a   :  { %p628_p5 = scmp.ne.s32.totalorder %s50_s28, %s627_s15  ;;  %p633_p7 = scmp.lt.s32.totalorder %s627_s15, %s627_s15 }
  0x2c   :  { %p634_p8 = por %p633_p7, %p632_p6 }
  0x2e   :  { %p635_p9 = pnand %p634_p8, %p628_p5 }
  0x30   :  { %638 = shalt.err (!%p635_p9)
}
  0x31   :  { %55 = dma.hbm_to_vmem [thread:$0]  %s792_s5, 1024, %s50_s28, [#allocation5], %s645_s13, %s645_s13, %s646_s14  }
  0x32   :  { %639 = dma.done.wait [#allocation3], 1024  }
  0x33   :  { %640 = vsyncadd [#allocation3], 4294966272 }
  0x34   :  { %641 = dma.done.wait [#allocation5], 2048  }
  0x35   :  { %642 = vsyncadd [#allocation5], 4294965248  ;;  %v648_v0 = vmov 0.0   ;;  %vm649_vm0 = vmmov 0   ;;  %v545_v1 = vld [vmem:[#allocation2] sm:$0xff]   ;;  %v546_v2 = vld [vmem:[#allocation2 + $0x8] sm:$0xff]  }
  0x36   :  { %478 = vmatprep.subr.bf16.mxu0 %v648_v0  ;;  %494 = vmatprep.mubr.msk.bf16.mxu0 %vm649_vm0, %v648_v0  ;;  %v547_v3 = vld [vmem:[#allocation2 + $0x10] sm:$0xff]   ;;  %v553_v4 = vld [vmem:[#allocation4] sm:$0xff]   ;;  %v548_v5 = vld [vmem:[#allocation2 + $0x18] sm:$0xff]  }
  0x37   :  { %498 = vmatprep.subr.bf16.mxu1 %v648_v0  ;;  %514 = vmatprep.mubr.msk.bf16.mxu1 %vm649_vm0, %v648_v0  ;;  %v554_v6 = vld [vmem:[#allocation4 + $0x8] sm:$0xff]   ;;  %v549_v7 = vld [vmem:[#allocation2 + $0x20] sm:$0xff]   ;;  %v555_v8 = vld [vmem:[#allocation4 + $0x10] sm:$0xff]  }
  0x38   :  { %479 = vmatpush3.bf16.msra.mxu0 %v545_v1  ;;  %499 = vmatpush3.bf16.msra.mxu1 %v553_v4  ;;  %v550_v9 = vld [vmem:[#allocation2 + $0x28] sm:$0xff]   ;;  %v556_v10 = vld [vmem:[#allocation4 + $0x18] sm:$0xff]   ;;  %v551_v11 = vld [vmem:[#allocation2 + $0x30] sm:$0xff]  }
  0x39   :  { %480 = vmatprep.subr.bf16.mxu0 %v648_v0  ;;  %500 = vmatprep.subr.bf16.mxu1 %v648_v0  ;;  %v557_v12 = vld [vmem:[#allocation4 + $0x20] sm:$0xff]   ;;  %v552_v13 = vld [vmem:[#allocation2 + $0x38] sm:$0xff]   ;;  %v558_v14 = vld [vmem:[#allocation4 + $0x28] sm:$0xff]  }
  0x3a   :  { %v68_v15 = vld [vmem:[%s787_s0] sm:$0xf]  ;;  %v559_v16 = vld [vmem:[#allocation4 + $0x30] sm:$0xff]   ;;  %v560_v17 = vld [vmem:[#allocation4 + $0x38] sm:$0xff]  }
  0x3b   :  { %v561_v18 = vld [vmem:[#allocation6] sm:$0xff]   ;;  %v562_v19 = vld [vmem:[#allocation6 + $0x8] sm:$0xff]   ;;  %v563_v20 = vld [vmem:[#allocation6 + $0x10] sm:$0xff]  }
  0x3c   :  { %481 = vmatpush3.bf16.msra.mxu0 %v546_v2  ;;  %501 = vmatpush3.bf16.msra.mxu1 %v554_v6  ;;  %v564_v21 = vld [vmem:[#allocation6 + $0x18] sm:$0xff]   ;;  %v565_v22 = vld [vmem:[#allocation6 + $0x20] sm:$0xff]   ;;  %v566_v23 = vld [vmem:[#allocation6 + $0x28] sm:$0xff]  }
  0x3d   :  { %482 = vmatprep.subr.bf16.mxu0 %v648_v0  ;;  %502 = vmatprep.subr.bf16.mxu1 %v648_v0  ;;  %v423_v24 = vld [vmem:[%s789_s2] ss:$0 sm:$0xff]  ;;  %v567_v33 = vld [vmem:[#allocation6 + $0x30] sm:$0xff]   ;;  %v568_v34 = vld [vmem:[#allocation6 + $0x38] sm:$0xff]  }
  0x3e   :  { %v432_v35 = vld [vmem:[%s791_s4] ss:$0 sm:$0xff] }
  0x3f   :  { %v441_v44 = vld [vmem:[%s793_s6] ss:$0 sm:$0xff] }
  0x40   :  { %483 = vmatpush3.bf16.msra.mxu0 %v547_v3  ;;  %503 = vmatpush3.bf16.msra.mxu1 %v555_v8 }
  0x41   :  { %484 = vmatprep.subr.bf16.mxu0 %v648_v0  ;;  %504 = vmatprep.subr.bf16.mxu1 %v648_v0 }
  0x44   :  { %485 = vmatpush3.bf16.msra.mxu0 %v548_v5  ;;  %505 = vmatpush3.bf16.msra.mxu1 %v556_v10 }
  0x45   :  { %486 = vmatprep.subr.bf16.mxu0 %v648_v0  ;;  %506 = vmatprep.subr.bf16.mxu1 %v648_v0 }
  0x48   :  { %487 = vmatpush3.bf16.msra.mxu0 %v549_v7  ;;  %507 = vmatpush3.bf16.msra.mxu1 %v557_v12 }
  0x49   :  { %488 = vmatprep.subr.bf16.mxu0 %v648_v0  ;;  %508 = vmatprep.subr.bf16.mxu1 %v648_v0 }
  0x4c   :  { %489 = vmatpush3.bf16.msra.mxu0 %v550_v9  ;;  %509 = vmatpush3.bf16.msra.mxu1 %v558_v14 }
  0x4d   :  { %490 = vmatprep.subr.bf16.mxu0 %v648_v0  ;;  %510 = vmatprep.subr.bf16.mxu1 %v648_v0 }
  0x50   :  { %491 = vmatpush3.bf16.msra.mxu0 %v551_v11  ;;  %511 = vmatpush3.bf16.msra.mxu1 %v559_v16 }
  0x51   :  { %492 = vmatprep.subr.bf16.mxu0 %v648_v0  ;;  %512 = vmatprep.subr.bf16.mxu1 %v648_v0 }
  0x54   :  { %493 = vmatpush3.bf16.msra.mxu0 %v552_v13  ;;  %513 = vmatpush3.bf16.msra.mxu1 %v560_v17 }
  0x55   :  { %518 = vmatprep.subr.bf16.mxu0 %v648_v0 }
  0x57   :  { %495 = vmatmul.mubr.bf16.vlgmr.msra.gmra.mrb[0].mxu0 %v68_v15 }
  0x58   :  { %534 = vmatprep.mubr.msk.bf16.mxu0 %vm649_vm0, %v648_v0  ;;  %519 = vmatpush3.bf16.msra.mxu0 %v561_v18 }
  0x59   :  { %520 = vmatprep.subr.bf16.mxu0 %v648_v0 }
  0x5c   :  { %521 = vmatpush3.bf16.msra.mxu0 %v562_v19 }
  0x5d   :  { %522 = vmatprep.subr.bf16.mxu0 %v648_v0 }
  0x60   :  { %523 = vmatpush3.bf16.msra.mxu0 %v563_v20 }
  0x61   :  { %524 = vmatprep.subr.bf16.mxu0 %v648_v0 }
  0x64   :  { %525 = vmatpush3.bf16.msra.mxu0 %v564_v21 }
  0x65   :  { %526 = vmatprep.subr.bf16.mxu0 %v648_v0 }
  0x68   :  { %527 = vmatpush3.bf16.msra.mxu0 %v565_v22 }
  0x69   :  { %528 = vmatprep.subr.bf16.mxu0 %v648_v0 }
  0x6c   :  { %529 = vmatpush3.bf16.msra.mxu0 %v566_v23 }
  0x6d   :  { %530 = vmatprep.subr.bf16.mxu0 %v648_v0 }
  0x70   :  { %531 = vmatpush3.bf16.msra.mxu0 %v567_v33 }
  0x71   :  { %532 = vmatprep.subr.bf16.mxu0 %v648_v0 }
  0x74   :  { %533 = vmatpush3.bf16.msra.mxu0 %v568_v34 }
 0x12a   :  { %v174_v25 = vpop.f32.mrb[0].mxu0 }
 0x12b   :  { %v175_v26 = vadd.f32 %v423_v24, %v174_v25  ;;  %v496_v27 = vpop.f32.mrb[1].mxu0 }
 0x12c   :  { %v177_v28 = vpop.f32.mrb[2].mxu0 }
 0x12d   :  { %vm180_vm1 = vcmp.ge.f32.partialorder %v175_v26, 0.0  ;;  %v181_v29 = vmul.f32 0.01, %v175_v26  ;;  %v497_v30 = vpop.f32.mrb[3].mxu0 }
 0x12f   :  { %v182_v31 = vsel %vm180_vm1, %v175_v26, %v181_v29 }
 0x130   :  { %v200_v32 = vpack.c.bf16 %v182_v31, %v182_v31 }
 0x132   :  { %515 = vmatmul.mubr.bf16.vlgmr.msra.gmra.mrb[0].mxu1 %v200_v32 }
 0x205   :  { %v289_v36 = vpop.f32.mrb[0].mxu1 }
 0x206   :  { %v290_v37 = vadd.f32 %v432_v35, %v289_v36  ;;  %v516_v38 = vpop.f32.mrb[1].mxu1 }
 0x207   :  { %v292_v39 = vpop.f32.mrb[2].mxu1 }
 0x208   :  { %vm295_vm2 = vcmp.ge.f32.partialorder %v290_v37, 0.0  ;;  %v296_v40 = vmul.f32 0.01, %v290_v37  ;;  %v517_v41 = vpop.f32.mrb[3].mxu1 }
 0x20a   :  { %v297_v42 = vsel %vm295_vm2, %v290_v37, %v296_v40 }
 0x20b   :  { %v315_v43 = vpack.c.bf16 %v297_v42, %v297_v42 }
 0x20d   :  { %535 = vmatmul.mubr.bf16.vlgmr.msra.gmra.mrb[4].mxu0 %v315_v43 }
 0x2e0   :  { %v404_v45 = vpop.f32.mrb[4].mxu0 }
 0x2e1   :  { %v405_v46 = vadd.f32 %v441_v44, %v404_v45  ;;  %v536_v47 = vpop.f32.mrb[5].mxu0 }
 0x2e2   :  { %v407_v48 = vpop.f32.mrb[6].mxu0 }
 0x2e3   :  { %v450_v49 = vmul.f32 -1.442695, %v405_v46  ;;  %v537_v50 = vpop.f32.mrb[7].mxu0 }
 0x2e5   :  { %569 = vpow2.f32 %v450_v49 }
 0x2ef   :  { %v570_v51 = vpop.eup %569 }
 0x2f0   :  { %v413_v52 = vadd.f32 1.0, %v570_v51 }
 0x2f2   :  { %571 = vrcp.f32 %v413_v52 }
 0x2fc   :  { %v572_v53 = vpop.eup %571 }
 0x2fd   :  { %416 = vst [vmem:[%s794_s7] sm:$0xff] %v572_v53 }
 0x2fe   :  { %421 = vsyncpa [#allocation3], 1 }
 0x2ff   :  { %422 = vsyncpa [#allocation5], 1 }

</bundles_post_ra>
